<compile_context>
chip_gen: v6e
topology: v6e:2x2x1
jax: 0.10.0
libtpu: 0.0.40
codegen_flags: <defaults>
</compile_context>

<pallas_src>
import jax
import jax.numpy as jnp
from jax.experimental import pallas as pl
from jax.experimental.pallas import tpu as pltpu


def _round_up(x, m):
    return (x + m - 1) // m * m


def _textcnn_kernel(x_ref, w_ref, b_ref, m_ref, wf_ref, bf_ref, o_ref):
    """One batch tile.

    x_ref : (TB, lout_t, Kpad)  bf16  im2col slab (taps stacked along K, zero-padded)
    w_ref : (Kpad, CT)          bf16  fused conv weight, branches packed along channels
    b_ref : (1, CT)             f32   conv biases (zero in padded channel columns)
    m_ref : (lout_t, CT)        f32   additive validity mask (0 valid / -1e30 invalid)
    wf_ref: (CT, CP)            bf16  FC weight (zero in padded rows/cols)
    bf_ref: (1, CP)             f32   FC bias
    o_ref : (TB, CP)            f32   logits (padded to CP lanes)
    """
    # --- Conv1d (all branches, all taps) as ONE lane-dense MXU matmul.
    acc = jnp.einsum('blk,kc->blc', x_ref[...], w_ref[...],
                     preferred_element_type=jnp.float32)        # (TB, lout_t, CT)

    # Bias + ReLU in f32, then mask invalid time positions per branch and
    # MaxPool1d over the full valid length (padded channel columns stay 0).
    y = jnp.maximum(acc + b_ref[...][None, :, :], 0.0)
    y = y + m_ref[...][None, :, :]
    feat = jnp.max(y, axis=1)                                   # (TB, CT) f32

    # --- concat is implicit in the packed channel layout; dropout = identity.
    # --- Linear(3C -> class_num): bf16 operands, f32 accumulation.
    out = jnp.dot(feat.astype(wf_ref.dtype), wf_ref[...],
                  preferred_element_type=jnp.float32) + bf_ref[...]
    o_ref[...] = out.astype(o_ref.dtype)


def prepare_textcnn_params(conv_ws, conv_bs, fc_w_t, fc_b, *,
                           kernel_sizes, seq_len, class_num):
    """One-time packing of weights into the fused, lane-dense kernel layout.

    conv_ws[i]: (k_i, H, C)   conv_bs[i]: (1, C)
    fc_w_t: (3C, class_num)   fc_b: (1, class_num)
    """
    assert seq_len >= max(kernel_sizes), "seq_len must be >= max kernel size"
    H = conv_ws[0].shape[1]
    C = conv_ws[0].shape[-1]
    n_branch = len(kernel_sizes)
    k_min, k_max = min(kernel_sizes), max(kernel_sizes)

    CT = _round_up(n_branch * C, 128)          # packed channels -> 128 lanes total
    CP = _round_up(class_num, 128)             # lane-dense logits
    Kpad = _round_up(k_max * H, 128)           # im2col contraction depth
    lout_t = _round_up(seq_len - k_min + 1, 8) # sublane-aligned time extent

    # Fused conv weight: tap j of branch i -> rows [j*H:(j+1)*H], cols [i*C:(i+1)*C].
    w_packed = jnp.zeros((Kpad, CT), jnp.float32)
    b_all = jnp.zeros((1, CT), jnp.float32)
    for i, (k, w, b) in enumerate(zip(kernel_sizes, conv_ws, conv_bs)):
        for j in range(k):
            w_packed = w_packed.at[j * H:(j + 1) * H, i * C:(i + 1) * C].set(
                w[j].astype(jnp.float32))
        b_all = b_all.at[:, i * C:(i + 1) * C].set(
            b.reshape(1, C).astype(jnp.float32))
    w_packed = w_packed.astype(jnp.bfloat16)

    # Additive time-validity mask: -1e30 where a branch's conv output does not
    # exist (pos >= L - k_i + 1); 0 elsewhere (incl. padded channel columns).
    mask = jnp.zeros((lout_t, CT), jnp.float32)
    for i, k in enumerate(kernel_sizes):
        lout_k = seq_len - k + 1
        if lout_k < lout_t:
            mask = mask.at[lout_k:, i * C:(i + 1) * C].set(-1e30)

    # FC weight/bias in the packed channel / padded class layout.
    wf = jnp.zeros((CT, CP), jnp.float32)
    wf = wf.at[:n_branch * C, :class_num].set(fc_w_t.astype(jnp.float32))
    wf = wf.astype(jnp.bfloat16)
    bf = jnp.zeros((1, CP), jnp.float32)
    bf = bf.at[:, :class_num].set(fc_b.reshape(1, class_num).astype(jnp.float32))

    meta = dict(kernel_sizes=tuple(kernel_sizes), seq_len=seq_len,
                class_num=class_num, H=H, C=C, CT=CT, CP=CP, Kpad=Kpad,
                lout_t=lout_t, k_max=k_max)
    return dict(w=w_packed, b=b_all, mask=mask, wf=wf, bf=bf, meta=meta)


def textcnn_forward(embedded, packed, *, batch_tile=32):
    """embedded: (B, L, H) (any float dtype). packed: output of prepare_textcnn_params.
    Returns (B, class_num) f32 logits."""
    meta = packed['meta']
    B, L, H = embedded.shape
    assert L == meta['seq_len'] and H == meta['H']
    k_max, lout_t = meta['k_max'], meta['lout_t']
    Kpad, CT, CP = meta['Kpad'], meta['CT'], meta['CP']
    class_num = meta['class_num']

    TB = _round_up(min(batch_tile, _round_up(B, 8)), 8)
    Bpad = _round_up(B, TB)

    # --- Per-call activation path: pad (batch, time), cast bf16, build im2col slab.
    Lpad = lout_t + k_max - 1
    x = jnp.zeros((Bpad, Lpad, H), jnp.bfloat16)
    x = x.at[:B, :L, :].set(embedded.astype(jnp.bfloat16))
    cols = [x[:, j:j + lout_t, :] for j in range(k_max)]         # aligned slices
    KH = k_max * H
    if Kpad > KH:
        cols.append(jnp.zeros((Bpad, lout_t, Kpad - KH), jnp.bfloat16))
    slab = jnp.concatenate(cols, axis=-1)                        # (Bpad, lout_t, Kpad)

    flops = 2 * Bpad * lout_t * Kpad * CT + 2 * Bpad * CT * CP
    bytes_accessed = (slab.size * 2 + Kpad * CT * 2 + CT * 4 + lout_t * CT * 4
                      + CT * CP * 2 + CP * 4 + Bpad * CP * 4)

    # VMEM budget derived from actual tile sizes (double-buffered I/O + resident weights).
    tile_bytes = (2 * TB * lout_t * Kpad * 2 + 2 * TB * CP * 4
                  + Kpad * CT * 2 + CT * 4 + lout_t * CT * 4 + CT * CP * 2 + CP * 4)
    vmem_limit = int(min(max(4 * tile_bytes, 4 << 20), 48 << 20))

    out = pl.pallas_call(
        _textcnn_kernel,
        out_shape=jax.ShapeDtypeStruct((Bpad, CP), jnp.float32),
        grid=(Bpad // TB,),
        in_specs=[
            pl.BlockSpec((TB, lout_t, Kpad), lambda b: (b, 0, 0)),   # im2col slab
            pl.BlockSpec((Kpad, CT), lambda b: (0, 0)),              # conv weight
            pl.BlockSpec((1, CT), lambda b: (0, 0)),                 # conv bias
            pl.BlockSpec((lout_t, CT), lambda b: (0, 0)),            # validity mask
            pl.BlockSpec((CT, CP), lambda b: (0, 0)),                # fc weight
            pl.BlockSpec((1, CP), lambda b: (0, 0)),                 # fc bias
        ],
        out_specs=pl.BlockSpec((TB, CP), lambda b: (b, 0)),
        compiler_params=pltpu.CompilerParams(
            dimension_semantics=("parallel",),
            vmem_limit_bytes=vmem_limit),
        cost_estimate=pl.CostEstimate(
            flops=int(flops), transcendentals=0,
            bytes_accessed=int(bytes_accessed)),
    )(slab, packed['w'], packed['b'], packed['mask'], packed['wf'], packed['bf'])

    return out[:B, :class_num]


def make_params(key, *, vocab_size, hidden_dim, num_channels, kernel_sizes,
                class_num, padding_idx=0):
    keys = jax.random.split(key, 2 + 2 * len(kernel_sizes) + 2)
    emb = 0.02 * jax.random.normal(keys[0], (vocab_size, hidden_dim), jnp.float32)
    emb = emb.at[padding_idx].set(0.0)          # padding_idx row is zero
    emb = emb.astype(jnp.bfloat16)              # bf16 table -> bf16 gather output
    conv_ws, conv_bs = [], []
    for i, k in enumerate(kernel_sizes):
        w = 0.1 * jax.random.normal(keys[1 + 2 * i], (k, hidden_dim, num_channels),
                                    jnp.float32)
        b = 0.1 * jax.random.normal(keys[2 + 2 * i], (1, num_channels), jnp.float32)
        conv_ws.append(w)
        conv_bs.append(b)
    fc_w_t = 0.1 * jax.random.normal(keys[-2],
                                     (num_channels * len(kernel_sizes), class_num),
                                     jnp.float32)
    fc_b = 0.1 * jax.random.normal(keys[-1], (1, class_num), jnp.float32)
    return emb, conv_ws, conv_bs, fc_w_t, fc_b


if __name__ == "__main__":
    # Small, module-consistent shapes (B / batch_tile chosen for a 2-step grid).
    B, L = 32, 16            # batch, max_len
    vocab_size = 128
    hidden_dim = 32
    num_channels = 16
    kernel_sizes = (3, 4, 5)
    class_num = 4

    key = jax.random.PRNGKey(0)
    pkey, tkey = jax.random.split(key)
    emb, conv_ws, conv_bs, fc_w_t, fc_b = make_params(
        pkey, vocab_size=vocab_size, hidden_dim=hidden_dim,
        num_channels=num_channels, kernel_sizes=kernel_sizes,
        class_num=class_num)

    # One-time parameter packing (hoisted out of the per-call path).
    packed = prepare_textcnn_params(conv_ws, conv_bs, fc_w_t, fc_b,
                                    kernel_sizes=kernel_sizes, seq_len=L,
                                    class_num=class_num)

    # Integer token ids (B, L); embedding gather is plain-JAX glue (bf16 table).
    tokens = jax.random.randint(tkey, (B, L), 0, vocab_size, dtype=jnp.int32)
    embedded = jnp.take(emb, tokens, axis=0)                 # (B, L, H) bf16

    out = textcnn_forward(embedded, packed, batch_tile=16)
    out = jax.block_until_ready(out)

    # Pure-JAX reference (same bf16-quantized activations / conv / FC weights, f32 math).
    xq = embedded.astype(jnp.float32)

    def ref_forward(x):
        feats = []
        for k, w, b in zip(kernel_sizes, conv_ws, conv_bs):
            wq = w.astype(jnp.bfloat16).astype(jnp.float32)
            Lout = L - k + 1
            acc = jnp.zeros((B, Lout, num_channels), jnp.float32)
            for j in range(k):
                acc = acc + jnp.einsum('blh,hc->blc', x[:, j:j + Lout, :], wq[j])
            acc = jnp.maximum(acc + b[None, :, :], 0.0)
            feats.append(jnp.max(acc, axis=1))
        feat = jnp.concatenate(feats, axis=-1)
        featq = feat.astype(jnp.bfloat16).astype(jnp.float32)
        wfq = fc_w_t.astype(jnp.bfloat16).astype(jnp.float32)
        return featq @ wfq + fc_b

    ref = ref_forward(xq)
    assert out.shape == (B, class_num)
    assert jnp.allclose(out, ref, atol=2e-3, rtol=2e-3), (out, ref)
    print("KERNEL_OK")
</pallas_src>

<mosaic_0001>
module attributes {stable_mosaic.version = 11 : i64} {
  func.func @_textcnn_kernel(%arg0: i32, %arg1: memref<16x16x256xbf16, #tpu.memory_space<vmem>>, %arg2: memref<256x128xbf16, #tpu.memory_space<vmem>>, %arg3: memref<1x128xf32, #tpu.memory_space<vmem>>, %arg4: memref<16x128xf32, #tpu.memory_space<vmem>>, %arg5: memref<128x128xbf16, #tpu.memory_space<vmem>>, %arg6: memref<1x128xf32, #tpu.memory_space<vmem>>, %arg7: memref<16x128xf32, #tpu.memory_space<vmem>>) attributes {dimension_semantics = [#tpu.dimension_semantics<parallel>], iteration_bounds = array<i64: 2>, scalar_prefetch = 0 : i64, scratch_operands = 0 : i64, tpu.core_type = #tpu.core_type<tc>, window_params = [{transform_indices = @transform_0, window_bounds = array<i64: 16, 16, 256>}, {pipeline_mode = #tpu.pipeline_mode<synchronous>, transform_indices = @transform_1, window_bounds = array<i64: 256, 128>}, {pipeline_mode = #tpu.pipeline_mode<synchronous>, transform_indices = @transform_2, window_bounds = array<i64: 1, 128>}, {pipeline_mode = #tpu.pipeline_mode<synchronous>, transform_indices = @transform_3, window_bounds = array<i64: 16, 128>}, {pipeline_mode = #tpu.pipeline_mode<synchronous>, transform_indices = @transform_4, window_bounds = array<i64: 128, 128>}, {pipeline_mode = #tpu.pipeline_mode<synchronous>, transform_indices = @transform_5, window_bounds = array<i64: 1, 128>}, {transform_indices = @transform_6, window_bounds = array<i64: 16, 128>}]} {
    %c0 = arith.constant 0 : index
    %c0_0 = arith.constant 0 : index
    %c0_1 = arith.constant 0 : index
    %0 = vector.load %arg1[%c0, %c0_0, %c0_1] : memref<16x16x256xbf16, #tpu.memory_space<vmem>>, vector<16x16x256xbf16>
    %c0_2 = arith.constant 0 : index
    %c0_3 = arith.constant 0 : index
    %1 = vector.load %arg2[%c0_2, %c0_3] : memref<256x128xbf16, #tpu.memory_space<vmem>>, vector<256x128xbf16>
    "tpu.trace_start"() <{level = 10 : i32, message = "blk,kc->blc"}> : () -> ()
    %cst = arith.constant dense<0.000000e+00> : vector<16x16x128xf32>
    %2 = tpu.matmul %0, %1, %cst {dimension_numbers = #tpu.dot_dimension_numbers<[2], [0], [0, 1], [1], [0, 0, 0, 1, 1, 1], [], []>} : vector<16x16x256xbf16>, vector<256x128xbf16>, vector<16x16x128xf32> -> vector<16x16x128xf32>
    "tpu.trace_stop"() : () -> ()
    %c0_4 = arith.constant 0 : index
    %c0_5 = arith.constant 0 : index
    %3 = vector.load %arg3[%c0_4, %c0_5] : memref<1x128xf32, #tpu.memory_space<vmem>>, vector<1x128xf32>
    %4 = vector.shape_cast %3 : vector<1x128xf32> to vector<1x1x128xf32>
    %5 = vector.broadcast %4 : vector<1x1x128xf32> to vector<16x16x128xf32>
    %6 = arith.addf %2, %5 : vector<16x16x128xf32>
    %cst_6 = arith.constant 0.000000e+00 : f32
    %7 = vector.broadcast %cst_6 : f32 to vector<16x16x128xf32>
    %8 = arith.maximumf %6, %7 : vector<16x16x128xf32>
    %c0_7 = arith.constant 0 : index
    %c0_8 = arith.constant 0 : index
    %9 = vector.load %arg4[%c0_7, %c0_8] : memref<16x128xf32, #tpu.memory_space<vmem>>, vector<16x128xf32>
    %10 = vector.shape_cast %9 : vector<16x128xf32> to vector<1x16x128xf32>
    %11 = vector.broadcast %10 : vector<1x16x128xf32> to vector<16x16x128xf32>
    %12 = arith.addf %8, %11 : vector<16x16x128xf32>
    %cst_9 = arith.constant dense<0xFF800000> : vector<16x128xf32>
    %13 = vector.multi_reduction <maximumf>, %12, %cst_9 [1] : vector<16x16x128xf32> to vector<16x128xf32>
    %14 = arith.truncf %13 : vector<16x128xf32> to vector<16x128xbf16>
    %c0_10 = arith.constant 0 : index
    %c0_11 = arith.constant 0 : index
    %15 = vector.load %arg5[%c0_10, %c0_11] : memref<128x128xbf16, #tpu.memory_space<vmem>>, vector<128x128xbf16>
    %cst_12 = arith.constant dense<0.000000e+00> : vector<16x128xf32>
    %16 = tpu.matmul %14, %15, %cst_12 {dimension_numbers = #tpu.dot_dimension_numbers<[1], [0], [0], [1], [0, 0, 1, 1], [], []>} : vector<16x128xbf16>, vector<128x128xbf16>, vector<16x128xf32> -> vector<16x128xf32>
    %c0_13 = arith.constant 0 : index
    %c0_14 = arith.constant 0 : index
    %17 = vector.load %arg6[%c0_13, %c0_14] : memref<1x128xf32, #tpu.memory_space<vmem>>, vector<1x128xf32>
    %18 = vector.broadcast %17 : vector<1x128xf32> to vector<16x128xf32>
    %19 = arith.addf %16, %18 : vector<16x128xf32>
    %c0_15 = arith.constant 0 : index
    %c0_16 = arith.constant 0 : index
    %20 = vector.load %arg7[%c0_15, %c0_16] : memref<16x128xf32, #tpu.memory_space<vmem>>, vector<16x128xf32>
    tpu.vector_store %arg7[%c0_15, %c0_16], %19 {strides = array<i32>} : memref<16x128xf32, #tpu.memory_space<vmem>>, vector<16x128xf32>,
    return
  }
  func.func @transform_0(%arg0: i32) -> (i32, i32, i32) {
    %c0_i32 = arith.constant 0 : i32
    %c0_i32_0 = arith.constant 0 : i32
    %c0_i32_1 = arith.constant 0 : i32
    return %arg0, %c0_i32, %c0_i32_0 : i32, i32, i32
  }
  func.func @transform_1(%arg0: i32) -> (i32, i32) {
    %c0_i32 = arith.constant 0 : i32
    %c0_i32_0 = arith.constant 0 : i32
    %c0_i32_1 = arith.constant 0 : i32
    return %c0_i32, %c0_i32_0 : i32, i32
  }
  func.func @transform_2(%arg0: i32) -> (i32, i32) {
    %c0_i32 = arith.constant 0 : i32
    %c0_i32_0 = arith.constant 0 : i32
    %c0_i32_1 = arith.constant 0 : i32
    return %c0_i32, %c0_i32_0 : i32, i32
  }
  func.func @transform_3(%arg0: i32) -> (i32, i32) {
    %c0_i32 = arith.constant 0 : i32
    %c0_i32_0 = arith.constant 0 : i32
    %c0_i32_1 = arith.constant 0 : i32
    return %c0_i32, %c0_i32_0 : i32, i32
  }
  func.func @transform_4(%arg0: i32) -> (i32, i32) {
    %c0_i32 = arith.constant 0 : i32
    %c0_i32_0 = arith.constant 0 : i32
    %c0_i32_1 = arith.constant 0 : i32
    return %c0_i32, %c0_i32_0 : i32, i32
  }
  func.func @transform_5(%arg0: i32) -> (i32, i32) {
    %c0_i32 = arith.constant 0 : i32
    %c0_i32_0 = arith.constant 0 : i32
    %c0_i32_1 = arith.constant 0 : i32
    return %c0_i32, %c0_i32_0 : i32, i32
  }
  func.func @transform_6(%arg0: i32) -> (i32, i32) {
    %c0_i32 = arith.constant 0 : i32
    %c0_i32_0 = arith.constant 0 : i32
    return %arg0, %c0_i32 : i32, i32
  }
}

</mosaic_0001>

<bundles_post_ra>
// kernel: tpu_custom_call.1
= control target key start
LH: loop header
LB: loop body
LE: loop exit
PB: predicated region body
PF: predicated region fallthrough
CT: control target
= control target key end

     0   :  { %11 = vsyncpa [#allocation3], 0  ;;  %s2287_s0 = inlined_call_operand.hbm [shape: bf16[32,16,256], index: 0, kind: input, shape index: {}]   ;;  %s2288_s1 = inlined_call_operand.hbm [shape: bf16[256,128], index: 1, kind: input, shape index: {}]   ;;  %s2289_s2 = inlined_call_operand.vmem [shape: f32[1,128], index: 2, kind: input, shape index: {}]   ;;  %s2290_s3 = inlined_call_operand.hbm [shape: f32[16,128], index: 3, kind: input, shape index: {}]   ;;  %s2291_s4 = inlined_call_operand.hbm [shape: bf16[128,128], index: 4, kind: input, shape index: {}]   ;;  %s2292_s5 = inlined_call_operand.vmem [shape: f32[1,128], index: 5, kind: input, shape index: {}]   ;;  %s2293_s6 = inlined_call_operand.hbm [shape: f32[32,128], index: 6, kind: output, shape index: {}]  }
   0x1   :  { %13 = vsyncpa [#allocation3 + $0x1], 0 }
   0x2   :  { %14 = vsyncpa [#allocation6], 0 }
   0x3   :  { %15 = vsyncpa [#allocation9], 0 }
   0x4   :  { %16 = vsyncpa [#allocation4], 0 }
   0x5   :  { %18 = vsyncpa [#allocation4 + $0x1], 0  ;;  %s1909_s21 = smov 0   ;;  %s1911_s22 = smov 0  }
   0x6   :  { %s1913_s23 = smov 0   ;;  %s1915_s24 = smov 0  }
   0x7 LB: > { %s1930_s25 = sadd.s32 4294967295, %s1859_s24   ;;  %s1285_s26 = sadd.s32 4294967294, %s1859_s24   ;;  %s1859_s24 = sphi %s1915_s24, %s2320_s24   ;;  %s1855_s23 = sphi %s1913_s23, %s2319_s23   ;;  %s1851_s22 = sphi %s1911_s22, %s2318_s22   ;;  %s1847_s21 = sphi %s1909_s21, %s2317_s21  }
   0x8   : > { %p44_p0 = scmp.ne.s32.totalorder %s1851_s22, %s1847_s21  ;;  %p2294_p1 = scmp.eq.s32.totalorder %s1930_s25, 0 }
   0x9   : > { %p173_p2 = scmp.eq.s32.totalorder %s1930_s25, 1  ;;  %p179_p3 = scmp.eq.s32.totalorder %s1285_s26, 1 }
   0xa   : > { %p1939_p4 = por %p2294_p1, %p44_p0  ;;  %p1286_p5 = scmp.ge.s32.totalorder %s1859_s24, 1 }
   0xb   : > { %p1944_p6 = por %p179_p3, %p44_p0  ;;  %p186_p7 = scmp.lt.s32.totalorder %s1859_s24, 3 }
   0xc   : > { %s2300_s27 = scalar_select %p1939_p4, 1, 0 }
   0xd   : > { %s2301_s28 = scalar_select %p1944_p6, 1, 0 }
   0xe   : > { %p1949_p8 = pnand %p1286_p5, %p186_p7  ;;  %s1861_s30 = smov [#allocation5]  }
   0xf   : > { %s198_s7 = sshll.u32 %s1861_s30, 4  ;;  %s1862_s9 = smov [#allocation7]   ;;  %s199_s7 = int_to_ptr.vmem [resolvable:$true] %s198_s7 }
  0x10   : > { %s2302_s29 = scalar_select %p1949_p8, 1, 0 }
  0x11   : > { %p1540_p9 = pneg %p1949_p8  ;;  %s214_s10 = sshll.u32 %s1862_s9, 4  ;;  %s215_s10 = int_to_ptr.vmem [resolvable:$true] %s214_s10 }
  0x12   : > { %s1692_s11 = scalar_lea.vmem %s199_s7, 2048  ;;  %p1700_p5 = scmp.lt.s32.totalorder %s199_s7, %s199_s7 }
  0x13   : > { %p1958_p11 = pnand %p1540_p9, %p2294_p1  ;;  %p1693_p13 = scmp.ne.s32.totalorder %s199_s7, %s1692_s11 }
  0x14   : > { %p1701_p7 = scmp.lt.s32.totalorder %s1692_s11, %s1692_s11 }
  0x15   : > { %p1683_p12 = pneg %p1958_p11 }
  0x16   : > { %p1702_p10 = por %p1701_p7, %p1700_p5 }
  0x17   : > { %p1695_p0 = pnand %p1693_p13, %p1683_p12 }
  0x19   : > { %p1696_p3 = pneg %p1695_p0 }
  0x1b   : > { %p1703_p9 = pnand %p1702_p10, %p1696_p3 }
  0x1d   : > { %1706 = shalt.err (!%p1703_p9)
}
  0x1e   : > { %s1863_s12 = smov 64   ;;  %s1864_s13 = smov 4  }
  0x1f   : > { %1543 = dma.hbm_to_vmem [thread:$0]  (!%p1958_p11), %s2288_s1, 2048, %s199_s7, [#allocation6], %s1863_s12, %s1863_s12, %s1864_s13  }
  0x20   : > { %s1718_s16 = scalar_lea.vmem %s215_s10, 256  ;;  %p1726_p10 = scmp.lt.s32.totalorder %s215_s10, %s215_s10 }
  0x21   : > { %p1719_p13 = scmp.ne.s32.totalorder %s215_s10, %s1718_s16  ;;  %p1727_p3 = scmp.lt.s32.totalorder %s1718_s16, %s1718_s16 }
  0x23   : > { %p1721_p0 = pnand %p1719_p13, %p1683_p12  ;;  %p1728_p7 = por %p1727_p3, %p1726_p10 }
  0x25   : > { %p1722_p5 = pneg %p1721_p0 }
  0x27   : > { %p1729_p9 = pnand %p1728_p7, %p1722_p5 }
  0x29   : > { %1732 = shalt.err (!%p1729_p9)
}
  0x2a   : > { %s2295_s17 = smov 128   ;;  %s2296_s18 = smov 8  }
  0x2b   : > { %1546 = dma.hbm_to_vmem [thread:$0]  (!%p1958_p11), %s2290_s3, 256, %s215_s10, [#allocation6], %s2295_s17, %s2295_s17, %s2296_s18  }
  0x2c   : > { %s1867_s26 = smov [#allocation8]   ;;  %s1987_s7 = sadd.s32 1, %s1859_s24  }
  0x2d   : > { %s227_s30 = sshll.u32 %s1867_s26, 4  ;;  %s228_s30 = int_to_ptr.vmem [resolvable:$true] %s227_s30 }
  0x2e   : > { %s1744_s9 = scalar_lea.vmem %s228_s30, 1024  ;;  %p1752_p10 = scmp.lt.s32.totalorder %s228_s30, %s228_s30 }
  0x2f   : > { %p1745_p13 = scmp.ne.s32.totalorder %s228_s30, %s1744_s9  ;;  %p1753_p3 = scmp.lt.s32.totalorder %s1744_s9, %s1744_s9 }
  0x31   : > { %p1747_p0 = pnand %p1745_p13, %p1683_p12  ;;  %p1754_p7 = por %p1753_p3, %p1752_p10 }
  0x33   : > { %p1748_p5 = pneg %p1747_p0 }
  0x35   : > { %p1755_p9 = pnand %p1754_p7, %p1748_p5 }
  0x37   : > { %1758 = shalt.err (!%p1755_p9)
}
  0x38   : > { %1549 = dma.hbm_to_vmem [thread:$0]  (!%p1958_p11), %s2291_s4, 1024, %s228_s30, [#allocation9], %s1863_s12, %s1863_s12, %s1864_s13  }
  0x39   : > { %s28_s14 = ssub.s32 %s1859_s24, %s1987_s7  ;;  %s31_s8 = sadd.s32 1, %s1855_s23 }
  0x3a   : > { %p29_p12 = scmp.eq.s32.totalorder %s28_s14, 0  ;;  %p38_p13 = scmp.ne.s32.totalorder %s1855_s23, %s1851_s22 }
  0x3b   : > { %p39_p0 = scmp.eq.s32.totalorder %s1859_s24, 0  ;;  %p1561_p5 = scmp.lt.s32.totalorder %s1859_s24, 2 }
  0x3c   : > { %s2008_s15 = scalar_select %p29_p12, %s1855_s23, %s31_s8  }
  0x3d   : > { %p40_p10 = por %p39_p0, %p38_p13  ;;  %p2012_p3 = por %p173_p2, %p38_p13 }
  0x3e   : > { %s244_s19 = sand.u32 1, %s1855_s23   ;;  %s1365_s20 = sshll.u32 %s1859_s24, 12 }
  0x3f   : > { %s2304_s16 = scalar_select %p2012_p3, 1, 0 }
  0x40   : > { %s1291_s26 = sshll.u32 %s244_s19, 8  ;;  %s2021_s12 = scalar_lea.hbm %s2287_s0, %s1365_s20 }
  0x41   : > { %s248_s13 = scalar_lea.vmem [#allocation2], %s1291_s26  ;;  %p2023_p11 = pnand %p1561_p5, %p40_p10 }
  0x42   : > { %s256_s30 = sshll.u32 %s248_s13, 4  ;;  %s2029_s14 = scalar_lea.sflag [#allocation3], %s244_s19  ;;  %s2027_s30 = int_to_ptr.vmem [resolvable:$true] %s256_s30 }
  0x43   : > { %s1759_s8 = scalar_lea.hbm %s2021_s12, 4096  ;;  %p1761_p7 = pneg %p2023_p11 }
  0x44   : > { %p1760_p2 = scmp.ne.s32.totalorder %s2021_s12, %s1759_s8  ;;  %s1764_s26 = scalar_lea.hbm %s2287_s0, 8192 }
  0x45   : > { %p1765_p13 = scmp.lt.s32.totalorder %s2021_s12, %s2287_s0  ;;  %p1766_p0 = scmp.lt.s32.totalorder %s1764_s26, %s1759_s8 }
  0x46   : > { %p1762_p9 = pnand %p1761_p7, %p1760_p2 }
  0x47   : > { %p1767_p5 = por %p1766_p0, %p1765_p13 }
  0x48   : > { %p1763_p12 = pneg %p1762_p9 }
  0x4a   : > { %p1768_p10 = pnand %p1767_p5, %p1763_p12 }
  0x4c   : > { %1771 = shalt.err (!%p1768_p10)
}
  0x4d   : > { %s1772_s19 = scalar_lea.vmem %s2027_s30, 4096  ;;  %s1868_s17 = smov [#allocation2]  }
  0x4e   : > { %p1773_p1 = scmp.ne.s32.totalorder %s2027_s30, %s1772_s19  ;;  %s1777_s18 = sshll.u32 %s1868_s17, 4  ;;  %s1778_s18 = int_to_ptr.vmem [resolvable:$false] %s1777_s18 }
  0x4f   : > { %s1779_s20 = scalar_lea.vmem %s1778_s18, 8192  ;;  %p1780_p9 = scmp.lt.s32.totalorder %s2027_s30, %s1778_s18 }
  0x50   : > { %p1775_p6 = pnand %p1773_p1, %p1761_p7  ;;  %p1781_p3 = scmp.lt.s32.totalorder %s1779_s20, %s1772_s19 }
  0x52   : > { %p1776_p2 = pneg %p1775_p6  ;;  %p1782_p4 = por %p1781_p3, %p1780_p9 }
  0x54   : > { %p1783_p8 = pnand %p1782_p4, %p1776_p2 }
  0x56   : > { %1786 = shalt.err (!%p1783_p8)
}
  0x57   : > { %s2306_s8 = smov 8   ;;  %s2307_s9 = smov 128  }
  0x58   : > { %1553 = dma.hbm_to_vmem [thread:$0]  (!%p2023_p11), %s2021_s12, 4096, %s2027_s30, %s2029_s14, %s2307_s9, %s2307_s9, %s2306_s8  }
  0x59   : > { %p2308_p1 = scmp.ne.s32.totalorder %s2302_s29, 0 }
  0x5a   : > { %s2056_s17 = sand.u32 (!%p2308_p1), 1, %s1851_s22   ;;  %p2309_p4 = scmp.ne.s32.totalorder (!%p2308_p1), %s2300_s27, 0 }
  0x5b   : > { %268 = sbr.rel (%p2308_p1) target bundleno = 647 (0x287), region = 44  ;;  %s1296_s18 = sshll.u32 (!%p2308_p1), %s2056_s17, 8 }
  0x5c   : > { %s271_s26 = scalar_lea.sflag (!%p2308_p1), [#allocation3], %s2056_s17  ;;  %s2060_s10 = scalar_lea.vmem (!%p2308_p1), [#allocation2], %s1296_s18 }
  0x60   : > { %1830 = dma.done.wait (%p2309_p4), %s271_s26, 4096  }
  0x61   : > { %1832 = vsyncadd (%p2309_p4), %s271_s26, 4294963200  ;;  %p2310_p6 = scmp.eq.s32.totalorder %s1930_s25, 0 }
  0x63   : > { %1834 = dma.done.wait (%p2310_p6), [#allocation6], 2304   ;;  %p2311_p8 = pmov %p2310_p6 }
  0x64   : > { %p2312_p3 = pmov %p2310_p6 }
  0x65   : > { %1836 = vsyncadd (%p2311_p8), [#allocation6], 4294964992 }
  0x66   : > { %1838 = dma.done.wait (%p2312_p3), [#allocation9], 1024   ;;  %p2313_p11 = pmov %p2312_p3 }
  0x67   : > { %v1609_v0 = vld [vmem:[#allocation5 + $0x78] sm:$0xff]   ;;  %v1611_v2 = vld [vmem:[#allocation5 + $0x70] sm:$0xff]   ;;  %v1613_v4 = vld [vmem:[#allocation5 + $0x68] sm:$0xff]   ;;  %v1869_v49 = vmov 0.0   ;;  %vm1870_vm0 = vmmov 0   ;;  %vm1055_vm1 = vcmask 1041409  }
  0x68   : > { %1840 = vsyncadd (%p2313_p11), [#allocation9], 4294966272  ;;  %v1610_v1 = vld [vmem:[#allocation5 + $0x38] sm:$0xff]   ;;  %1367 = vmatprep.subr.bf16.mxu0 %v1609_v0  ;;  %1508 = vmatprep.subr.bf16.mxu1 %v1609_v0  ;;  %v1612_v3 = vld [vmem:[#allocation5 + $0x30] sm:$0xff]   ;;  %vm1057_vm2 = vcmask 1042434   ;;  %vm1059_vm3 = vcmask 1043459  }
  0x69   : > { %1368 = vmatpush3.bf16.msra.mxu0 %v1610_v1  ;;  %1516 = vmatpush3.bf16.msra.mxu1 %v1610_v1  ;;  %v1614_v5 = vld [vmem:[#allocation5 + $0x28] sm:$0xff]   ;;  %v1615_v6 = vld [vmem:[#allocation5 + $0x60] sm:$0xff]   ;;  %v1617_v8 = vld [vmem:[#allocation5 + $0x58] sm:$0xff]   ;;  %vm1061_vm4 = vcmask 1044484   ;;  %vm1063_vm5 = vcmask 1045509   ;;  %vm1065_vm6 = vcmask 1046534  }
  0x6a   : > { %1369 = vmatprep.subr.bf16.mxu0 %v1611_v2  ;;  %1509 = vmatprep.subr.bf16.mxu1 %v1611_v2  ;;  %v1616_v7 = vld [vmem:[#allocation5 + $0x20] sm:$0xff]   ;;  %v1618_v9 = vld [vmem:[#allocation5 + $0x18] sm:$0xff]   ;;  %v1619_v10 = vld [vmem:[#allocation5 + $0x50] sm:$0xff]   ;;  %vm1067_vm7 = vcmask 1047559   ;;  %s1300_s12 = sshll.u32 %s2056_s17, 4  ;;  %s1366_s19 = sshll.u32 %s1930_s25, 8 }
  0x6b   : > { %v1627_v11 = vld [vmem:[%s2060_s10 + $0x4] ss:$8 sps:$4 sm:$0xff]   ;;  %v1620_v12 = vld [vmem:[#allocation5 + $0x10] sm:$0xff]   ;;  %v1625_v18 = vld [vmem:[%s2060_s10] ss:$8 sps:$4 sm:$0xff]   ;;  %s314_s14 = scalar_lea.vmem [#allocation10], %s1300_s12  ;;  %s2244_s9 = scalar_lea.hbm %s2293_s6, %s1366_s19 }
  0x6c   : > { %v1633_v13 = vld [vmem:[%s2060_s10 + $0x94] ss:$8 sps:$4 sm:$0xff]   ;;  %v1621_v14 = vld [vmem:[#allocation5 + $0x48] sm:$0xff]   ;;  %677 = vmatprep.mubr.bf16.mxu0 %v1627_v11  ;;  %v1623_v16 = vld [vmem:[#allocation5 + $0x40] sm:$0xff]   ;;  %s1183_s13 = sshll.u32 %s314_s14, 4  ;;  %s1170_s18 = scalar_lea.sflag [#allocation4], %s2056_s17  ;;  %s2239_s13 = int_to_ptr.vmem [resolvable:$true] %s1183_s13 }
  0x6d   : > { %1370 = vmatpush3.bf16.msra.mxu0 %v1612_v3  ;;  %1517 = vmatpush3.bf16.msra.mxu1 %v1612_v3  ;;  %v1622_v15 = vld [vmem:[#allocation5 + $0x8] sm:$0xff]   ;;  %v1624_v17 = vld [vmem:[#allocation5] sm:$0xff]   ;;  %v1631_v19 = vld [vmem:[%s2060_s10 + $0x90] ss:$8 sps:$4 sm:$0xff]   ;;  %s1787_s26 = scalar_lea.vmem %s2239_s13, 256  ;;  %p2314_p12 = scmp.ne.s32.totalorder %s2304_s16, 0 }
  0x6e   : > { %1371 = vmatprep.subr.bf16.mxu0 %v1613_v4  ;;  %1510 = vmatprep.subr.bf16.mxu1 %v1613_v4  ;;  %v1628_v20 = vld [vmem:[%s2060_s10 + $0x14] ss:$8 sps:$4 sm:$0xff]   ;;  %v1637_v21 = vld [vmem:[%s2060_s10 + $0xa4] ss:$8 sps:$4 sm:$0xff]   ;;  %v1630_v22 = vld [vmem:[%s2060_s10 + $0x10] ss:$8 sps:$4 sm:$0xff]   ;;  %p1788_p7 = scmp.ne.s32.totalorder %s2239_s13, %s1787_s26 }
  0x6f   : > { %749 = vmatprep.mubr.bf16.mxu1 %v1633_v13  ;;  %v1639_v23 = vld [vmem:[%s2060_s10 + $0xa0] ss:$8 sps:$4 sm:$0xff]   ;;  %v1634_v24 = vld [vmem:[%s2060_s10 + $0x24] ss:$8 sps:$4 sm:$0xff]   ;;  %v1643_v25 = vld [vmem:[%s2060_s10 + $0xb4] ss:$8 sps:$4 sm:$0xff]  }
  0x70   : > { %v1636_v26 = vld [vmem:[%s2060_s10 + $0x20] ss:$8 sps:$4 sm:$0xff]   ;;  %v1645_v27 = vld [vmem:[%s2060_s10 + $0xb0] ss:$8 sps:$4 sm:$0xff]   ;;  %v1640_v28 = vld [vmem:[%s2060_s10 + $0x34] ss:$8 sps:$4 sm:$0xff]   ;;  %p1789_p13 = pnand %p1788_p7, %p2314_p12 }
  0x71   : > { %1372 = vmatpush3.bf16.msra.mxu0 %v1614_v5  ;;  %1518 = vmatpush3.bf16.msra.mxu1 %v1614_v5  ;;  %v1649_v29 = vld [vmem:[%s2060_s10 + $0xc4] ss:$8 sps:$4 sm:$0xff]   ;;  %v1642_v30 = vld [vmem:[%s2060_s10 + $0x30] ss:$8 sps:$4 sm:$0xff]   ;;  %v1651_v31 = vld [vmem:[%s2060_s10 + $0xc0] ss:$8 sps:$4 sm:$0xff]  }
  0x72   : > { %1373 = vmatprep.subr.bf16.mxu0 %v1615_v6  ;;  %1511 = vmatprep.subr.bf16.mxu1 %v1615_v6  ;;  %v1646_v32 = vld [vmem:[%s2060_s10 + $0x44] ss:$8 sps:$4 sm:$0xff]   ;;  %v1655_v33 = vld [vmem:[%s2060_s10 + $0xd4] ss:$8 sps:$4 sm:$0xff]   ;;  %v1648_v34 = vld [vmem:[%s2060_s10 + $0x40] ss:$8 sps:$4 sm:$0xff]   ;;  %p1790_p0 = pneg %p1789_p13 }
  0x73   : > { %v1657_v35 = vld [vmem:[%s2060_s10 + $0xd0] ss:$8 sps:$4 sm:$0xff]   ;;  %v1652_v36 = vld [vmem:[%s2060_s10 + $0x54] ss:$8 sps:$4 sm:$0xff]   ;;  %v1661_v37 = vld [vmem:[%s2060_s10 + $0xe4] ss:$8 sps:$4 sm:$0xff]  }
  0x74   : > { %v1654_v38 = vld [vmem:[%s2060_s10 + $0x50] ss:$8 sps:$4 sm:$0xff]   ;;  %v1663_v39 = vld [vmem:[%s2060_s10 + $0xe0] ss:$8 sps:$4 sm:$0xff]   ;;  %v1658_v40 = vld [vmem:[%s2060_s10 + $0x64] ss:$8 sps:$4 sm:$0xff]  }
  0x75   : > { %1374 = vmatpush3.bf16.msra.mxu0 %v1616_v7  ;;  %1519 = vmatpush3.bf16.msra.mxu1 %v1616_v7  ;;  %v1667_v41 = vld [vmem:[%s2060_s10 + $0xf4] ss:$8 sps:$4 sm:$0xff]   ;;  %v1660_v42 = vld [vmem:[%s2060_s10 + $0x60] ss:$8 sps:$4 sm:$0xff]   ;;  %v1669_v43 = vld [vmem:[%s2060_s10 + $0xf0] ss:$8 sps:$4 sm:$0xff]  }
  0x76   : > { %1375 = vmatprep.subr.bf16.mxu0 %v1617_v8  ;;  %1512 = vmatprep.subr.bf16.mxu1 %v1617_v8  ;;  %v1664_v44 = vld [vmem:[%s2060_s10 + $0x74] ss:$8 sps:$4 sm:$0xff]   ;;  %v1666_v45 = vld [vmem:[%s2060_s10 + $0x70] ss:$8 sps:$4 sm:$0xff]   ;;  %v1670_v46 = vld [vmem:[%s2060_s10 + $0x84] ss:$8 sps:$4 sm:$0xff]  }
  0x77   : > { %v1672_v47 = vld [vmem:[%s2060_s10 + $0x80] ss:$8 sps:$4 sm:$0xff]   ;;  %v1675_v51 = vld [vmem:[#allocation8 + $0x28] sm:$0xff]   ;;  %v1676_v52 = vld [vmem:[#allocation8 + $0x20] sm:$0xff]   ;;  %s1871_s25 = smov [#allocation10]  }
  0x78   : > { %v1673_v48 = vld [vmem:[#allocation8 + $0x38] sm:$0xff]   ;;  %v1674_v50 = vld [vmem:[#allocation8 + $0x30] sm:$0xff]   ;;  %v1679_v55 = vld [vmem:[#allocation8 + $0x8] sm:$0xff]   ;;  %s1791_s10 = sshll.u32 %s1871_s25, 4  ;;  %s1792_s10 = int_to_ptr.vmem [resolvable:$false] %s1791_s10 }
  0x79   : > { %1376 = vmatpush3.bf16.msra.mxu0 %v1618_v9  ;;  %1520 = vmatpush3.bf16.msra.mxu1 %v1618_v9  ;;  %v1677_v53 = vld [vmem:[#allocation8 + $0x18] sm:$0xff]   ;;  %v1678_v54 = vld [vmem:[#allocation8 + $0x10] sm:$0xff]   ;;  %v1680_v56 = vld [vmem:[#allocation8] sm:$0xff]   ;;  %s1793_s27 = scalar_lea.vmem %s1792_s10, 512  ;;  %p1794_p5 = scmp.lt.s32.totalorder %s2239_s13, %s1792_s10 }
  0x7a   : > { %1377 = vmatprep.subr.bf16.mxu0 %v1619_v10  ;;  %1513 = vmatprep.subr.bf16.mxu1 %v1619_v10  ;;  %v2109_v59 = vld [vmem:[%s2289_s2] ss:$0 sm:$0xff]  ;;  %v2115_v10 = vld [vmem:[#allocation7 + $0x8] sm:$0xff]  ;;  %p1795_p10 = scmp.lt.s32.totalorder %s1793_s27, %s1787_s26 }
  0x7b   : > { %v2113_v9 = vld [vmem:[#allocation7] sm:$0xff] }
  0x7c   : > { %p1796_p2 = por %p1795_p10, %p1794_p5 }
  0x7d   : > { %1378 = vmatpush3.bf16.msra.mxu0 %v1620_v12  ;;  %1521 = vmatpush3.bf16.msra.mxu1 %v1620_v12 }
  0x7e   : > { %1379 = vmatprep.subr.bf16.mxu0 %v1621_v14  ;;  %1514 = vmatprep.subr.bf16.mxu1 %v1621_v14  ;;  %p1797_p9 = pnand %p1796_p2, %p1790_p0 }
  0x81   : > { %1380 = vmatpush3.bf16.msra.mxu0 %v1622_v15  ;;  %1522 = vmatpush3.bf16.msra.mxu1 %v1622_v15 }
  0x82   : > { %1381 = vmatprep.subr.bf16.mxu0 %v1623_v16  ;;  %1515 = vmatprep.subr.bf16.mxu1 %v1623_v16 }
  0x85   : > { %1382 = vmatpush3.bf16.msra.mxu0 %v1624_v17  ;;  %1523 = vmatpush3.bf16.msra.mxu1 %v1624_v17 }
  0x86   : > { %1488 = vmatprep.subr.bf16.mxu1 %v1869_v49 }
  0x88   : > { %678 = vmatmul.mubr.bf16.vlgmr.msra.gmra.mxu0 %v1625_v18  ;;  %750 = vmatmul.mubr.bf16.vlgmr.msra.gmra.mxu1 %v1631_v19 }
  0x89   : > { %685 = vmatprep.mubr.bf16.mxu0 %v1628_v20  ;;  %757 = vmatprep.mubr.bf16.mxu1 %v1637_v21 }
  0x8a   : > { %1489 = vmatpush3.bf16.msra.mxu1 %v1673_v48 }
  0x8b   : > { %1490 = vmatprep.subr.bf16.mxu1 %v1869_v49 }
  0x8e   : > { %1491 = vmatpush3.bf16.msra.mxu1 %v1674_v50 }
  0x8f   : > { %1492 = vmatprep.subr.bf16.mxu1 %v1869_v49 }
  0x90   : > { %686 = vmatmul.mubr.bf16.gmra.mxu0 %v1630_v22  ;;  %758 = vmatmul.mubr.bf16.gmra.mxu1 %v1639_v23 }
  0x91   : > { %693 = vmatprep.mubr.bf16.mxu0 %v1634_v24  ;;  %765 = vmatprep.mubr.bf16.mxu1 %v1643_v25 }
  0x92   : > { %1493 = vmatpush3.bf16.msra.mxu1 %v1675_v51 }
  0x93   : > { %1494 = vmatprep.subr.bf16.mxu1 %v1869_v49 }
  0x96   : > { %1495 = vmatpush3.bf16.msra.mxu1 %v1676_v52 }
  0x97   : > { %1496 = vmatprep.subr.bf16.mxu1 %v1869_v49 }
  0x98   : > { %694 = vmatmul.mubr.bf16.gmra.mxu0 %v1636_v26  ;;  %766 = vmatmul.mubr.bf16.gmra.mxu1 %v1645_v27 }
  0x99   : > { %701 = vmatprep.mubr.bf16.mxu0 %v1640_v28  ;;  %773 = vmatprep.mubr.bf16.mxu1 %v1649_v29 }
  0x9a   : > { %1497 = vmatpush3.bf16.msra.mxu1 %v1677_v53 }
  0x9b   : > { %1498 = vmatprep.subr.bf16.mxu1 %v1869_v49 }
  0x9e   : > { %1499 = vmatpush3.bf16.msra.mxu1 %v1678_v54 }
  0x9f   : > { %1500 = vmatprep.subr.bf16.mxu1 %v1869_v49 }
  0xa0   : > { %702 = vmatmul.mubr.bf16.gmra.mxu0 %v1642_v30  ;;  %774 = vmatmul.mubr.bf16.gmra.mxu1 %v1651_v31 }
  0xa1   : > { %709 = vmatprep.mubr.bf16.mxu0 %v1646_v32  ;;  %781 = vmatprep.mubr.bf16.mxu1 %v1655_v33 }
  0xa2   : > { %1501 = vmatpush3.bf16.msra.mxu1 %v1679_v55 }
  0xa3   : > { %1502 = vmatprep.subr.bf16.mxu1 %v1869_v49 }
  0xa6   : > { %1503 = vmatpush3.bf16.msra.mxu1 %v1680_v56 }
  0xa8   : > { %710 = vmatmul.mubr.bf16.gmra.mxu0 %v1648_v34  ;;  %782 = vmatmul.mubr.bf16.gmra.mxu1 %v1657_v35 }
  0xa9   : > { %717 = vmatprep.mubr.bf16.mxu0 %v1652_v36  ;;  %789 = vmatprep.mubr.bf16.mxu1 %v1661_v37 }
  0xb0   : > { %718 = vmatmul.mubr.bf16.gmra.mxu0 %v1654_v38  ;;  %790 = vmatmul.mubr.bf16.gmra.mxu1 %v1663_v39 }
  0xb1   : > { %725 = vmatprep.mubr.bf16.mxu0 %v1658_v40  ;;  %797 = vmatprep.mubr.bf16.mxu1 %v1667_v41 }
  0xb8   : > { %726 = vmatmul.mubr.bf16.gmra.mxu0 %v1660_v42  ;;  %798 = vmatmul.mubr.bf16.gmra.mxu1 %v1669_v43 }
  0xb9   : > { %733 = vmatprep.mubr.bf16.mxu0 %v1664_v44  ;;  %1504 = vmatprep.mubr.msk.bf16.mxu1 %vm1870_vm0, %v1869_v49 }
  0xc0   : > { %734 = vmatmul.mubr.bf16.gmra.mxu0 %v1666_v45 }
  0xc1   : > { %741 = vmatprep.mubr.bf16.mxu0 %v1670_v46 }
  0xc8   : > { %742 = vmatmul.mubr.bf16.gmra.mxu0 %v1672_v47 }
 0x148   : > { %v1383_v57 = vpop.f32.mrf.mxu0  ;;  %v1437_v58 = vpop.f32.mrf.mxu1 }
 0x14a   : > { %v1384_v60 = vpop.f32.mrf.mxu0  ;;  %v1438_v61 = vpop.f32.mrf.mxu1 }
 0x14b   : > { %v1385_v62 = vadd.f32 %v1384_v60, %v1383_v57  ;;  %v1439_v12 = vadd.f32 %v1438_v61, %v1437_v58 }
 0x14c   : > { %v1386_v63 = vpop.f32.mrf.mxu0  ;;  %v1440_v0 = vpop.f32.mrf.mxu1 }
 0x14d   : > { %v680_v1 = vadd.f32 %v1385_v62, %v2109_v59  ;;  %v752_v20 = vadd.f32 %v1439_v12, %v2109_v59 }
 0x14e   : > { %v1387_v2 = vpop.f32.mrf.mxu0  ;;  %v1441_v3 = vpop.f32.mrf.mxu1 }
 0x14f   : > { %v1388_v4 = vadd.f32 %v1387_v2, %v1386_v63  ;;  %v806_v7 = vmax.f32 %v680_v1, 0.0  ;;  %v1442_v13 = vadd.f32 %v1441_v3, %v1440_v0  ;;  %v824_v27 = vmax.f32 %v752_v20, 0.0 }
 0x150   : > { %v1389_v5 = vpop.f32.mrf.mxu0  ;;  %v1443_v6 = vpop.f32.mrf.mxu1 }
 0x151   : > { %v683_v8 = vadd.f32 %v1388_v4, %v2109_v59  ;;  %v840_v18 = vadd.f32 %v2113_v9, %v806_v7  ;;  %v755_v22 = vadd.f32 %v1442_v13, %v2109_v59  ;;  %v858_v33 = vadd.f32 %v2113_v9, %v824_v27 }
 0x152   : > { %v1390_v11 = vpop.f32.mrf.mxu0  ;;  %v1444_v14 = vpop.f32.mrf.mxu1 }
 0x153   : > { %v807_v15 = vmax.f32 %v683_v8, 0.0  ;;  %v825_v28 = vmax.f32 %v755_v22, 0.0  ;;  %v1445_v38 = vadd.f32 %v1444_v14, %v1443_v6  ;;  %v1391_v42 = vadd.f32 %v1390_v11, %v1389_v5 }
 0x154   : > { %v1392_v16 = vpop.f32.mrf.mxu0  ;;  %v1446_v17 = vpop.f32.mrf.mxu1 }
 0x155   : > { %v841_v19 = vadd.f32 %v2115_v10, %v807_v15  ;;  %v859_v34 = vadd.f32 %v2115_v10, %v825_v28  ;;  %v760_v48 = vadd.f32 %v1445_v38, %v2109_v59  ;;  %v688_v52 = vadd.f32 %v1391_v42, %v2109_v59 }
 0x156   : > { %v1393_v21 = vpop.f32.mrf.mxu0  ;;  %v1447_v23 = vpop.f32.mrf.mxu1 }
 0x157   : > { %v872_v24 = vmax.f32 %v840_v18, %v841_v19  ;;  %v1394_v37 = vadd.f32 %v1393_v21, %v1392_v16  ;;  %v1448_v40 = vadd.f32 %v1447_v23, %v1446_v17  ;;  %v935_v43 = vmax.f32 %v858_v33, %v859_v34 }
 0x158   : > { %v1395_v25 = vpop.f32.mrf.mxu0  ;;  %v1449_v26 = vpop.f32.mrf.mxu1  ;;  %v826_v58 = vmax.f32 %v760_v48, 0.0  ;;  %v808_v63 = vmax.f32 %v688_v52, 0.0 }
 0x159   : > { %v873_v46 = vrot.slane %v872_v24, 4  ;;  %v691_v47 = vadd.f32 %v1394_v37, %v2109_v59  ;;  %v763_v49 = vadd.f32 %v1448_v40, %v2109_v59  ;;  %v936_v53 = vrot.slane %v935_v43, 4 }
 0x15a   : > { %v1396_v29 = vpop.f32.mrf.mxu0  ;;  %v1450_v30 = vpop.f32.mrf.mxu1  ;;  %v860_v7 = vadd.f32 %v2113_v9, %v826_v58  ;;  %v842_v13 = vadd.f32 %v2113_v9, %v808_v63 }
 0x15b   : > { %v874_v56 = vmax.f32 %v872_v24, %v873_v46  ;;  %v809_v57 = vmax.f32 %v691_v47, 0.0  ;;  %v827_v60 = vmax.f32 %v763_v49, 0.0  ;;  %v937_v0 = vmax.f32 %v935_v43, %v936_v53 }
 0x15c   : > { %v1398_v31 = vpop.f32.mrf.mxu0  ;;  %v1452_v32 = vpop.f32.mrf.mxu1  ;;  %v1397_v3 = vadd.f32 %v1396_v29, %v1395_v25  ;;  %v1451_v4 = vadd.f32 %v1450_v30, %v1449_v26 }
 0x15d   : > { %v875_v5 = vrot.slane %v874_v56, 2  ;;  %v843_v6 = vadd.f32 %v2115_v10, %v809_v57  ;;  %v861_v8 = vadd.f32 %v2115_v10, %v827_v60  ;;  %v938_v14 = vrot.slane %v937_v0, 2 }
 0x15e   : > { %v1399_v35 = vpop.f32.mrf.mxu0  ;;  %v1453_v36 = vpop.f32.mrf.mxu1  ;;  %v696_v18 = vadd.f32 %v1397_v3, %v2109_v59  ;;  %v768_v19 = vadd.f32 %v1451_v4, %v2109_v59 }
 0x15f   : > { %v1400_v15 = vadd.f32 %v1399_v35, %v1398_v31  ;;  %v1454_v20 = vadd.f32 %v1453_v36, %v1452_v32  ;;  %v876_v21 = vmax.f32 %v874_v56, %v875_v5  ;;  %v879_v22 = vmax.f32 %v842_v13, %v843_v6 }
 0x160   : > { %v1401_v39 = vpop.f32.mrf.mxu0  ;;  %v1455_v41 = vpop.f32.mrf.mxu1  ;;  %v942_v23 = vmax.f32 %v860_v7, %v861_v8  ;;  %v2139_v26 = vmax.f32 %v937_v0, %v938_v14  ;;  %v810_v30 = vmax.f32 %v696_v18, 0.0  ;;  %v828_v33 = vmax.f32 %v768_v19, 0.0 }
 0x161   : > { %v699_v27 = vadd.f32 %v1400_v15, %v2109_v59  ;;  %v771_v34 = vadd.f32 %v1454_v20, %v2109_v59  ;;  %v877_v35 = vrot.slane %v876_v21, 1  ;;  %v880_v37 = vrot.slane %v879_v22, 4 }
 0x162   : > { %v1402_v44 = vpop.f32.mrf.mxu0  ;;  %v1456_v45 = vpop.f32.mrf.mxu1  ;;  %v943_v38 = vrot.slane %v942_v23, 4  ;;  %v940_v46 = vrot.slane %v2139_v26, 1  ;;  %v844_v53 = vadd.f32 %v2113_v9, %v810_v30 }
 0x163   : > { %v1403_v31 = vadd.f32 %v1402_v44, %v1401_v39  ;;  %v1457_v32 = vadd.f32 %v1456_v45, %v1455_v41  ;;  %v811_v47 = vmax.f32 %v699_v27, 0.0  ;;  %v862_v44 = vadd.f32 %v2113_v9, %v828_v33 }
 0x164   : > { %v1404_v50 = vpop.f32.mrf.mxu0  ;;  %v2126_v51 = vpop.f32.mrf.mxu1  ;;  %v829_v56 = vmax.f32 %v771_v34, 0.0  ;;  %v2147_v57 = vmax.f32 %v876_v21, %v877_v35  ;;  %v2149_v41 = vmax.f32 %v879_v22, %v880_v37  ;;  %v2151_v45 = vmax.f32 %v942_v23, %v943_v38 }
 0x165   : > { %v704_v39 = vadd.f32 %v1403_v31, %v2109_v59 }
 0x166   : > { %v1405_v54 = vpop.f32.mrf.mxu0  ;;  %v2129_v55 = vpop.f32.mrf.mxu1  ;;  %v882_v15 = vrot.slane %v2149_v41, 2 }
 0x167   : > { %v1406_v42 = vadd.f32 %v1405_v54, %v1404_v50  ;;  %v776_v50 = vadd.f32 %v1457_v32, %v2109_v59  ;;  %v1460_v63 = vadd.f32 %v2129_v55, %v2126_v51  ;;  %v812_v8 = vmax.f32 %v704_v39, 0.0 }
 0x168   : > { %v1407_v61 = vpop.f32.mrf.mxu0  ;;  %v2131_v62 = vpop.f32.mrf.mxu1 }
 0x169   : > { %v707_v60 = vadd.f32 %v1406_v42, %v2109_v59  ;;  %v779_v21 = vadd.f32 %v1460_v63, %v2109_v59 }
 0x16a   : > { %v1408_v1 = vpop.f32.mrf.mxu0  ;;  %v1462_v2 = vpop.f32.mrf.mxu1 }
 0x16b   : > { %v1409_v43 = vadd.f32 %v1408_v1, %v1407_v61  ;;  %v845_v1 = vadd.f32 %v2115_v10, %v811_v47  ;;  %v1463_v5 = vadd.f32 %v1462_v2, %v2131_v62  ;;  %v813_v19 = vmax.f32 %v707_v60, 0.0 }
 0x16c   : > { %v1410_v11 = vpop.f32.mrf.mxu0  ;;  %v1464_v12 = vpop.f32.mrf.mxu1  ;;  %v831_v32 = vmax.f32 %v779_v21, 0.0  ;;  %v945_v21 = vrot.slane %v2151_v45, 2 }
 0x16d   : > { %v712_v61 = vadd.f32 %v1409_v43, %v2109_v59  ;;  %v2165_v2 = vmax.f32 %v844_v53, %v845_v1  ;;  %v847_v37 = vadd.f32 %v2115_v10, %v813_v19 }
 0x16e   : > { %v1411_v16 = vpop.f32.mrf.mxu0  ;;  %v1465_v17 = vpop.f32.mrf.mxu1 }
 0x16f   : > { %v1412_v48 = vadd.f32 %v1411_v16, %v1410_v11  ;;  %v863_v11 = vadd.f32 %v2115_v10, %v829_v56  ;;  %v1466_v13 = vadd.f32 %v1465_v17, %v1464_v12  ;;  %v830_v16 = vmax.f32 %v776_v50, 0.0 }
 0x170   : > { %v1413_v24 = vpop.f32.mrf.mxu0  ;;  %v1467_v25 = vpop.f32.mrf.mxu1  ;;  %v814_v20 = vmax.f32 %v712_v61, 0.0  ;;  %v784_v12 = vadd.f32 %v1463_v5, %v2109_v59 }
 0x171   : > { %v715_v3 = vadd.f32 %v1412_v48, %v2109_v59  ;;  %v2170_v27 = vmax.f32 %v862_v44, %v863_v11  ;;  %v864_v30 = vadd.f32 %v2113_v9, %v830_v16 }
 0x172   : > { %v1414_v28 = vpop.f32.mrf.mxu0  ;;  %v1468_v29 = vpop.f32.mrf.mxu1  ;;  %v848_v38 = vadd.f32 %v2113_v9, %v814_v20  ;;  %v832_v47 = vmax.f32 %v784_v12, 0.0  ;;  %v887_v20 = vrot.slane %v2165_v2, 4 }
 0x173   : > { %v1415_v4 = vadd.f32 %v1414_v28, %v1413_v24  ;;  %v1469_v14 = vadd.f32 %v1468_v29, %v1467_v25  ;;  %v815_v23 = vmax.f32 %v715_v3, 0.0  ;;  %v846_v25 = vadd.f32 %v2113_v9, %v812_v8 }
 0x174   : > { %v1416_v36 = vpop.f32.mrf.mxu0  ;;  %v1470_v40 = vpop.f32.mrf.mxu1  ;;  %v787_v28 = vadd.f32 %v1466_v13, %v2109_v59  ;;  %v866_v5 = vadd.f32 %v2113_v9, %v832_v47 }
 0x175   : > { %v720_v24 = vadd.f32 %v1415_v4, %v2109_v59  ;;  %v792_v29 = vadd.f32 %v1469_v14, %v2109_v59  ;;  %v849_v42 = vadd.f32 %v2115_v10, %v815_v23  ;;  %v893_v63 = vmax.f32 %v846_v25, %v847_v37 }
 0x176   : > { %v1417_v49 = vpop.f32.mrf.mxu0  ;;  %v1471_v52 = vpop.f32.mrf.mxu1 }
 0x177   : > { %v1418_v0 = vadd.f32 %v1417_v49, %v1416_v36  ;;  %v1472_v55 = vadd.f32 %v1471_v52, %v1470_v40  ;;  %v816_v43 = vmax.f32 %v720_v24, 0.0  ;;  %v833_v52 = vmax.f32 %v787_v28, 0.0 }
 0x178   : > { %v1419_v54 = vpop.f32.mrf.mxu0  ;;  %v1473_v58 = vpop.f32.mrf.mxu1  ;;  %v834_v53 = vmax.f32 %v792_v29, 0.0  ;;  %v900_v4 = vmax.f32 %v848_v38, %v849_v42  ;;  %v894_v23 = vrot.slane %v893_v63, 4 }
 0x179   : > { %v723_v22 = vadd.f32 %v1418_v0, %v2109_v59  ;;  %v795_v35 = vadd.f32 %v1472_v55, %v2109_v59  ;;  %v865_v0 = vadd.f32 %v2115_v10, %v831_v32  ;;  %v867_v11 = vadd.f32 %v2115_v10, %v833_v52 }
 0x17a   : > { %v1420_v6 = vpop.f32.mrf.mxu0  ;;  %v1474_v7 = vpop.f32.mrf.mxu1 }
 0x17b   : > { %v1421_v18 = vadd.f32 %v1420_v6, %v1419_v54  ;;  %v817_v36 = vmax.f32 %v723_v22, 0.0  ;;  %v1475_v44 = vadd.f32 %v1474_v7, %v1473_v58  ;;  %v835_v54 = vmax.f32 %v795_v35, 0.0 }
 0x17c   : > { %v1422_v51 = vpop.f32.mrf.mxu0  ;;  %v1476_v62 = vpop.f32.mrf.mxu1  ;;  %v850_v7 = vadd.f32 %v2113_v9, %v816_v43  ;;  %v956_v22 = vmax.f32 %v864_v30, %v865_v0  ;;  %v963_v28 = vmax.f32 %v866_v5, %v867_v11  ;;  %v901_v35 = vrot.slane %v900_v4, 4 }
 0x17d   : > { %v728_v31 = vadd.f32 %v1421_v18, %v2109_v59  ;;  %v851_v1 = vadd.f32 %v2115_v10, %v817_v36  ;;  %v800_v3 = vadd.f32 %v1475_v44, %v2109_v59  ;;  %v868_v18 = vadd.f32 %v2113_v9, %v834_v53 }
 0x17e   : > { %v1423_v17 = vpop.f32.mrf.mxu0  ;;  %v1477_v40 = vpop.f32.mrf.mxu1  ;;  %v888_v30 = vmax.f32 %v2165_v2, %v887_v20  ;;  %v957_v43 = vrot.slane %v956_v22, 4  ;;  %v895_v53 = vmax.f32 %v893_v63, %v894_v23  ;;  %v883_v63 = vmax.f32 %v2149_v41, %v882_v15 }
 0x17f   : > { %v1424_v33 = vadd.f32 %v1423_v17, %v1422_v51  ;;  %v818_v56 = vmax.f32 %v728_v31, 0.0  ;;  %v1478_v61 = vadd.f32 %v1477_v40, %v1476_v62  ;;  %v836_v13 = vmax.f32 %v800_v3, 0.0 }
 0x180   : > { %v1425_v34 = vpop.f32.mrf.mxu0  ;;  %v869_v51 = vadd.f32 %v2115_v10, %v835_v54  ;;  %v907_v62 = vmax.f32 %v850_v7, %v851_v1  ;;  %v902_v54 = vmax.f32 %v900_v4, %v901_v35  ;;  %v889_v5 = vrot.slane %v888_v30, 2 }
 0x181   : > { %v731_v48 = vadd.f32 %v1424_v33, %v2109_v59  ;;  %v803_v14 = vadd.f32 %v1478_v61, %v2109_v59  ;;  %v852_v16 = vadd.f32 %v2113_v9, %v818_v56  ;;  %v870_v29 = vadd.f32 %v2113_v9, %v836_v13 }
 0x182   : > { %v1426_v49 = vpop.f32.mrf.mxu0  ;;  %v970_v37 = vmax.f32 %v868_v18, %v869_v51  ;;  %v908_v36 = vrot.slane %v907_v62, 4  ;;  %v896_v7 = vrot.slane %v895_v53, 2  ;;  %v903_v4 = vrot.slane %v902_v54, 2 }
 0x183   : > { %v1427_v39 = vadd.f32 %v1426_v49, %v1425_v34  ;;  %v819_v50 = vmax.f32 %v731_v48, 0.0  ;;  %v837_v31 = vmax.f32 %v803_v14, 0.0  ;;  %v950_v34 = vrot.slane %v2170_v27, 4 }
 0x184   : > { %v1428_v60 = vpop.f32.mrf.mxu0  ;;  %v971_v2 = vrot.slane %v970_v37, 4  ;;  %v909_v61 = vmax.f32 %v907_v62, %v908_v36  ;;  %v890_v20 = vmax.f32 %v888_v30, %v889_v5 }
 0x185   : > { %v853_v6 = vadd.f32 %v2115_v10, %v819_v50  ;;  %v736_v8 = vadd.f32 %v1427_v39, %v2109_v59  ;;  %v871_v40 = vadd.f32 %v2115_v10, %v837_v31  ;;  %v964_v39 = vrot.slane %v963_v28, 4 }
 0x186   : > { %v1429_v58 = vpop.f32.mrf.mxu0  ;;  %v951_v50 = vmax.f32 %v2170_v27, %v950_v34  ;;  %v972_v14 = vmax.f32 %v970_v37, %v971_v2  ;;  %v910_v18 = vrot.slane %v909_v61, 2 }
 0x187   : > { %v1430_v55 = vadd.f32 %v1429_v58, %v1428_v60  ;;  %v914_v24 = vmax.f32 %v852_v16, %v853_v6  ;;  %v820_v12 = vmax.f32 %v736_v8, 0.0  ;;  %v977_v44 = vmax.f32 %v870_v29, %v871_v40 }
 0x188   : > { %v1431_v19 = vpop.f32.mrf.mxu0  ;;  %v958_v6 = vmax.f32 %v956_v22, %v957_v43  ;;  %v965_v11 = vmax.f32 %v963_v28, %v964_v39  ;;  %v952_v27 = vrot.slane %v951_v50, 2  ;;  %v897_v22 = vmax.f32 %v895_v53, %v896_v7 }
 0x189   : > { %v739_v17 = vadd.f32 %v1430_v55, %v2109_v59  ;;  %v915_v47 = vrot.slane %v914_v24, 4  ;;  %v854_v48 = vadd.f32 %v2113_v9, %v820_v12  ;;  %v978_v0 = vrot.slane %v977_v44, 4 }
 0x18a   : > { %v1432_v25 = vpop.f32.mrf.mxu0  ;;  %v959_v41 = vrot.slane %v958_v6, 2  ;;  %v966_v62 = vrot.slane %v965_v11, 2  ;;  %v884_v12 = vrot.slane %v883_v63, 1  ;;  %v911_v28 = vmax.f32 %v909_v61, %v910_v18 }
 0x18b   : > { %v1433_v33 = vadd.f32 %v1432_v25, %v1431_v19  ;;  %v821_v38 = vmax.f32 %v739_v17, 0.0  ;;  %v916_v8 = vmax.f32 %v914_v24, %v915_v47  ;;  %v979_v51 = vmax.f32 %v977_v44, %v978_v0 }
 0x18c   : > { %v1434_v32 = vpop.f32.mrf.mxu0  ;;  %v2213_v19 = vmax.f32 %v2139_v26, %v940_v46  ;;  %v946_v17 = vmax.f32 %v2151_v45, %v945_v21  ;;  %v973_v25 = vrot.slane %v972_v14, 2  ;;  %v984_v26 = vpack.c.bf16 %v2147_v57, %v2147_v57 }
 0x18d   : > { %v744_v42 = vadd.f32 %v1433_v33, %v2109_v59  ;;  %v855_v49 = vadd.f32 %v2115_v10, %v821_v38  ;;  %v917_v15 = vrot.slane %v916_v8, 2  ;;  %v980_v29 = vrot.slane %v979_v51, 2 }
 0x18e   : > { %v1435_v52 = vpop.f32.mrf.mxu0  ;;  %v891_v46 = vrot.slane %v890_v20, 1  ;;  %v960_v33 = vmax.f32 %v958_v6, %v959_v41  ;;  %v898_v35 = vrot.slane %v897_v22, 1  ;;  %v967_v37 = vmax.f32 %v965_v11, %v966_v62 }
 0x18f   : > { %v1436_v56 = vadd.f32 %v1435_v52, %v1434_v32  ;;  %v921_v60 = vmax.f32 %v854_v48, %v855_v49  ;;  %v822_v1 = vmax.f32 %v744_v42, 0.0  ;;  %v918_v34 = vmax.f32 %v916_v8, %v917_v15 }
 0x190   : > { %v885_v30 = vmax.f32 %v883_v63, %v884_v12  ;;  %v947_v36 = vrot.slane %v946_v17, 1  ;;  %v974_v45 = vmax.f32 %v972_v14, %v973_v25  ;;  %v912_v42 = vrot.slane %v911_v28, 1 }
 0x191   : > { %v747_v3 = vadd.f32 %v1436_v56, %v2109_v59  ;;  %v922_v58 = vrot.slane %v921_v60, 4  ;;  %v856_v55 = vadd.f32 %v2113_v9, %v822_v1  ;;  %v904_v9 = vmax.f32 %v902_v54, %v903_v4 }
 0x192   : > { %v981_v43 = vmax.f32 %v979_v51, %v980_v29  ;;  %v993_v48 = vpack.c.bf16 %v2213_v19, %v2213_v19  ;;  %v892_v57 = vmax.f32 %v890_v20, %v891_v46  ;;  %v961_v49 = vrot.slane %v960_v33, 1 }
 0x193   : > { %v823_v13 = vmax.f32 %v747_v3, 0.0  ;;  %v923_v16 = vmax.f32 %v921_v60, %v922_v58  ;;  %v905_v40 = vrot.slane %v904_v9, 1  ;;  %v919_v52 = vrot.slane %v918_v34, 1 }
 0x194   : > { %v899_v53 = vmax.f32 %v897_v22, %v898_v35  ;;  %v968_v39 = vrot.slane %v967_v37, 1  ;;  %v948_v54 = vmax.f32 %v946_v17, %v947_v36  ;;  %v975_v60 = vrot.slane %v974_v45, 1 }
 0x195   : > { %v857_v59 = vadd.f32 %v2115_v10, %v823_v13  ;;  %v924_v23 = vrot.slane %v923_v16, 2  ;;  %v953_v10 = vmax.f32 %v951_v50, %v952_v27  ;;  %v985_v50 = vpack.c.bf16 %v885_v30, %v885_v30 }
 0x196   : > { %v906_v2 = vmax.f32 %v904_v9, %v905_v40  ;;  %v913_v0 = vmax.f32 %v911_v28, %v912_v42  ;;  %v982_v1 = vrot.slane %v981_v43, 1  ;;  %v1039_v5 = vunpack.c.l.b16 %v984_v26 }
 0x197   : > { %v928_v24 = vmax.f32 %v856_v55, %v857_v59  ;;  %v925_v38 = vmax.f32 %v923_v16, %v924_v23  ;;  %v954_v21 = vrot.slane %v953_v10, 1  ;;  %v986_v6 = vpack.c.bf16 %v892_v57, %v892_v57 }
 0x198   : > { %v962_v8 = vmax.f32 %v960_v33, %v961_v49  ;;  %v920_v58 = vmax.f32 %v918_v34, %v919_v52  ;;  %v987_v63 = vpack.c.bf16 %v899_v53, %v899_v53  ;;  %v969_v7 = vmax.f32 %v967_v37, %v968_v39  ;;  %v1350_v52 = vld [vmem:[%s2292_s5] ss:$0 sm:$0xff] }
 0x199   : > { %v929_v31 = vrot.slane %v928_v24, 4  ;;  %v926_v44 = vrot.slane %v925_v38, 1  ;;  %v955_v61 = vmax.f32 %v953_v10, %v954_v21  ;;  %v1040_v27 = vunpack.c.l.b16 %v985_v50 }
 0x19a   : > { %v994_v4 = vpack.c.bf16 %v948_v54, %v948_v54  ;;  %v988_v14 = vpack.c.bf16 %v906_v2, %v906_v2  ;;  %v976_v16 = vmax.f32 %v974_v45, %v975_v60  ;;  %v989_v51 = vpack.c.bf16 %v913_v0, %v913_v0 }
 0x19b   : > { %v930_v32 = vmax.f32 %v928_v24, %v929_v31  ;;  %v927_v11 = vmax.f32 %v925_v38, %v926_v44  ;;  %v995_v18 = vpack.c.bf16 %v955_v61, %v955_v61  ;;  %v983_v55 = vmax.f32 %v981_v43, %v982_v1 }
 0x19c   : > { %v1048_v19 = vunpack.c.l.b16 %v993_v48  ;;  %v1041_v20 = vunpack.c.l.b16 %v986_v6  ;;  %v996_v41 = vpack.c.bf16 %v962_v8, %v962_v8  ;;  %v990_v15 = vpack.c.bf16 %v920_v58, %v920_v58 }
 0x19d   : > { %v931_v47 = vrot.slane %v930_v32, 2  ;;  %v1042_v22 = vunpack.c.l.b16 %v987_v63  ;;  %v997_v62 = vpack.c.bf16 %v969_v7, %v969_v7  ;;  %v991_v23 = vpack.c.bf16 %v927_v11, %v927_v11 }
 0x19e   : > { %v1056_v12 = vsel %vm1055_vm1, %v1040_v27, %v1039_v5  ;;  %v1049_v17 = vunpack.c.l.b16 %v994_v4  ;;  %v1043_v9 = vunpack.c.l.b16 %v988_v14  ;;  %v998_v25 = vpack.c.bf16 %v976_v16, %v976_v16 }
 0x19f   : > { %v932_v56 = vmax.f32 %v930_v32, %v931_v47  ;;  %v1050_v10 = vunpack.c.l.b16 %v995_v18  ;;  %v1044_v28 = vunpack.c.l.b16 %v989_v51  ;;  %v999_v29 = vpack.c.bf16 %v983_v55, %v983_v55 }
 0x1a0   : > { %v1058_v26 = vsel %vm1057_vm2, %v1041_v20, %v1056_v12  ;;  %v1051_v46 = vunpack.c.l.b16 %v996_v41  ;;  %v1045_v33 = vunpack.c.l.b16 %v990_v15  ;;  %v1052_v37 = vunpack.c.l.b16 %v997_v62 }
 0x1a1   : > { %v933_v3 = vrot.slane %v932_v56, 1  ;;  %v1060_v35 = vsel %vm1059_vm3, %v1042_v22, %v1058_v26  ;;  %v1046_v38 = vunpack.c.l.b16 %v991_v23  ;;  %v1053_v36 = vunpack.c.l.b16 %v998_v25 }
 0x1a2   : > { %v1062_v30 = vsel %vm1061_vm4, %v1043_v9, %v1060_v35  ;;  %v1054_v45 = vunpack.c.l.b16 %v999_v29 }
 0x1a3   : > { %v934_v13 = vmax.f32 %v932_v56, %v933_v3  ;;  %v1064_v21 = vsel %vm1063_vm5, %v1044_v28, %v1062_v30 }
 0x1a4   : > { %v1066_v43 = vsel %vm1065_vm6, %v1045_v33, %v1064_v21 }
 0x1a5   : > { %v992_v59 = vpack.c.bf16 %v934_v13, %v934_v13  ;;  %v1068_v48 = vsel %vm1067_vm7, %v1046_v38, %v1066_v43 }
 0x1a7   : > { %v1047_v24 = vunpack.c.l.b16 %v992_v59 }
 0x1a9   : > { %v1069_v31 = vsel %vm1055_vm1, %v1048_v19, %v1047_v24 }
 0x1aa   : > { %v1070_v34 = vsel %vm1057_vm2, %v1049_v17, %v1069_v31 }
 0x1ab   : > { %v1071_v32 = vsel %vm1059_vm3, %v1050_v10, %v1070_v34 }
 0x1ac   : > { %v1072_v40 = vsel %vm1061_vm4, %v1051_v46, %v1071_v32 }
 0x1ad   : > { %v1073_v42 = vsel %vm1063_vm5, %v1052_v37, %v1072_v40 }
 0x1ae   : > { %v1074_v47 = vsel %vm1065_vm6, %v1053_v36, %v1073_v42 }
 0x1af   : > { %v1075_v57 = vsel %vm1067_vm7, %v1054_v45, %v1074_v47 }
 0x1b0   : > { %v1076_v49 = vpack.c.b16 %v1075_v57, %v1068_v48 }
 0x1b2   : > { %1505 = vmatmul.mubr.bf16.vlgmr.msra.gmra.mxu1 %v1076_v49 }
 0x272   : > { %v1160_v53 = vpop.f32.mrf.mxu1 }
 0x273   : > { %v1161_v39 = vadd.f32 %v1350_v52, %v1160_v53 }
 0x274   : > { %v1506_v44 = vpop.f32.mrf.mxu1 }
 0x275   : > { %1167 = vst [vmem:[%s314_s14] sm:$0xff] %v1161_v39 }
 0x276   : > { %v1163_v56 = vpop.f32.mrf.mxu1 }
 0x277   : > { %v1164_v50 = vadd.f32 %v1350_v52, %v1163_v56 }
 0x278   : > { %v1507_v54 = vpop.f32.mrf.mxu1 }
 0x279   : > { %1168 = vst [vmem:[%s314_s14 + $0x8] sm:$0xff] %v1164_v50 }
 0x27a   : > { %1800 = shalt.err (!%p1797_p9)
}
 0x27b   : > { %s1801_s29 = scalar_lea.hbm %s2244_s9, 256  ;;  %s1805_s11 = scalar_lea.hbm %s2293_s6, 512 }
 0x27c   : > { %p1802_p1 = scmp.ne.s32.totalorder %s2244_s9, %s1801_s29  ;;  %p1806_p8 = scmp.lt.s32.totalorder %s2244_s9, %s2293_s6 }
 0x27d   : > { %p1807_p3 = scmp.lt.s32.totalorder %s1805_s11, %s1801_s29 }
 0x27e   : > { %p1803_p4 = pnand %p1802_p1, %p2314_p12 }
 0x27f   : > { %p1808_p11 = por %p1807_p3, %p1806_p8 }
 0x280   : > { %p1804_p6 = pneg %p1803_p4 }
 0x282   : > { %p1809_p7 = pnand %p1808_p11, %p1804_p6 }
 0x284   : > { %1812 = shalt.err (!%p1809_p7)
}
 0x285   : > { %s1872_s20 = smov 128   ;;  %s1873_s8 = smov 8  }
 0x286   : > { %1538 = dma.vmem_to_hbm [thread:$0]  (%p2314_p12), %s2239_s13, 256, %s2244_s9, %s1170_s18, %s1872_s20, %s1872_s20, %s1873_s8  }
 0x287 PF: > { %s1198_s26 = sand.u32 1, %s1847_s21   ;;  %p2315_p13 = scmp.ne.s32.totalorder %s2301_s28, 0 }
 0x288   : > { %p2316_p0 = scmp.ge.s32.totalorder %s1859_s24, 2  ;;  %s1199_s25 = scalar_lea.sflag [#allocation4], %s1198_s26 }
 0x28a   : > { %p1555_p5 = pnand %p2316_p0, %p2315_p13 }
 0x28c   : > { %p1556_p10 = pneg %p1555_p5 }
 0x28e   : > { %1842 = dma.done.wait (%p1556_p10), %s1199_s25, 256  }
 0x28f   : > { %1844 = vsyncadd (%p1556_p10), %s1199_s25, 4294967040  ;;  %p21_p2 = scmp.ge.s32.totalorder %s1987_s7, 4   ;;  %s2317_s21 = smov %s1851_s22 }
 0x290   : > { %s2318_s22 = smov %s1855_s23  ;;  %s2319_s23 = smov %s2008_s15 }
 0x291   : > { %s2320_s24 = smov %s1987_s7  ;;  %23 = sbr.rel (!%p21_p2) target bundleno = 7 (0x7), region = 101 }
 0x296   :  { %1204 = vsyncpa [#allocation3], 1 }
 0x297   :  { %1206 = vsyncpa [#allocation3 + $0x1], 1 }
 0x298   :  { %1207 = vsyncpa [#allocation6], 1 }
 0x299   :  { %1208 = vsyncpa [#allocation9], 1 }
 0x29a   :  { %1209 = vsyncpa [#allocation4], 1 }
 0x29b   :  { %1211 = vsyncpa [#allocation4 + $0x1], 1 }

</bundles_post_ra>
